<compile_context>
chip_gen: v7x
topology: tpu7x:2x2x1
jax: 0.10.0
libtpu: 0.0.40
codegen_flags: <defaults>
</compile_context>

<pallas_src>
import functools

import jax
import jax.numpy as jnp
from jax.experimental import pallas as pl
from jax.experimental.pallas import tpu as pltpu

LEAKY_SLOPE = 0.2
_HAS_PL_RECIPROCAL = hasattr(pl, "reciprocal")


def _leaky(v):
    return jnp.where(v >= 0, v, LEAKY_SLOPE * v)


def _cdiv(a, b):
    return -(-a // b)


def _round_up(a, m):
    return _cdiv(a, m) * m


def band_attention_kernel(x_ref,
                          wi1_ref, bi1_ref, wi2_ref, bi2_ref,
                          ww1_ref, bw1_ref, ww2_ref, bw2_ref, ww3_ref, bw3_ref,
                          o_ref, *, nodes, bands):
    N, F = nodes, bands
    L = N * F
    tb = x_ref.shape[0]
    Lp = x_ref.shape[1]                    # lane-padded width (multiple of 128)

    # Fast path: each 128-lane chunk holds whole bands, so the node reduction is
    # (a) a fold over aligned full-lane chunks (tile read once from VMEM) and
    # (b) a pltpu.roll tree inside a single 128-lane vreg (XLU slot).
    fast = (Lp == L) and (L % 128 == 0) and (F & (F - 1) == 0) and (128 % F == 0)

    if fast:
        C = L // 128
        ch0 = x_ref[:, 0:128].astype(jnp.float32)
        s = ch0
        m = ch0
        # TODO(synk): for very large N*F switch this unrolled chunk fold (and the
        # store loop below) to lax.fori_loop to bound generated code size.
        for c in range(1, C):
            ch = x_ref[:, c * 128:(c + 1) * 128].astype(jnp.float32)
            s = s + ch
            m = jnp.maximum(m, ch)
        shift = 64
        while shift >= F:
            s = s + pltpu.roll(s, shift, axis=1)
            m = jnp.maximum(m, pltpu.roll(m, shift, axis=1))
            shift //= 2
        sum_f = s[:, :F]                                           # (tb, F)
        max_f = m[:, :F]
    else:
        # TODO(synk): slow fallback (relayout + masked slices) for band counts
        # that are not powers of two / lane-unaligned layouts.
        xf = x_ref[:, :L].astype(jnp.float32).reshape(tb, N, F)
        sum_f = jnp.sum(xf, axis=1)
        max_f = jnp.max(xf, axis=1)

    combined = (sum_f * (1.0 / N) + max_f) * 0.5                   # (tb, F)

    # ---- band_interaction: Linear -> LeakyReLU -> Linear -> Sigmoid --------
    hi = _leaky(jnp.dot(combined, wi1_ref[...],
                        preferred_element_type=jnp.float32) + bi1_ref[...])
    inter = jax.nn.sigmoid(jnp.dot(hi, wi2_ref[...],
                                   preferred_element_type=jnp.float32) + bi2_ref[...])

    # ---- band_weights: Linear -> LeakyReLU -> Dropout(id) -> Linear ->
    #                    LeakyReLU -> Linear -> Softmax(bands) ---------------
    z = combined * inter
    h1 = _leaky(jnp.dot(z, ww1_ref[...],
                        preferred_element_type=jnp.float32) + bw1_ref[...])
    h2 = _leaky(jnp.dot(h1, ww2_ref[...],
                        preferred_element_type=jnp.float32) + bw2_ref[...])
    logits = jnp.dot(h2, ww3_ref[...],
                     preferred_element_type=jnp.float32) + bw3_ref[...]
    logits = logits - jnp.max(logits, axis=-1, keepdims=True)
    e = jnp.exp(logits)
    denom = jnp.sum(e, axis=-1, keepdims=True)
    if _HAS_PL_RECIPROCAL:
        weights = e * pl.reciprocal(denom, approx=True)   # divide on idle EUP slot
    else:
        weights = e / denom                               # older-jax fallback

    # ---- apply weights: f32 multiply, 128-lane aligned unmasked stores ------
    if fast:
        w128 = jnp.tile(weights, (1, 128 // F))                    # (tb, 128) f32
        for c in range(L // 128):
            sl = slice(c * 128, (c + 1) * 128)
            o_ref[:, sl] = (x_ref[:, sl].astype(jnp.float32) * w128).astype(o_ref.dtype)
    else:
        w_full = jnp.tile(weights, (1, N))
        if Lp > L:
            w_full = jnp.concatenate(
                [w_full, jnp.zeros((tb, Lp - L), jnp.float32)], axis=1)
        o_ref[...] = (x_ref[...].astype(jnp.float32) * w_full).astype(o_ref.dtype)


def _choose_batch_tile(b_padded, row_bytes, target_bytes):
    """Rows per batch tile: multiple of 8, per-buffer size <= target_bytes,
    preferring an even grid length (keeps both v7x TensorCores busy)."""
    tb = (max(1, target_bytes // max(row_bytes, 1)) // 8) * 8
    tb = max(8, min(tb, b_padded))
    if b_padded > 8:
        cand = tb
        while cand >= 8 and _cdiv(b_padded, cand) % 2 == 1:
            cand -= 8
        if cand >= 8:
            tb = cand
    return tb


def enhanced_band_attention(x, params, *, target_tile_bytes=None):
    """x: (batch, num_samples, num_nodes, num_bands) or (B, num_nodes, num_bands)."""
    orig_shape = x.shape
    if x.ndim == 4:
        b, s, n, f = orig_shape
        x3 = x.reshape(b * s, n, f)
    else:
        x3 = x
    B, N, F = x3.shape
    L = N * F
    Lp = _round_up(L, 128)            # lane-dense, unmasked-store friendly width
    Bp = _round_up(B, 8)

    wi1, bi1, wi2, bi2, ww1, bw1, ww2, bw2, ww3, bw3 = params
    H = wi1.shape[1]

    x2 = x3.reshape(B, L)
    if Bp != B or Lp != L:
        x2 = jnp.pad(x2, ((0, Bp - B), (0, Lp - L)))

    # Per-generation VMEM budget (128 MiB v5e/v6e -> ~8 MiB tiles, 64 MiB v7x -> ~4 MiB).
    try:
        vmem_cap = int(pltpu.get_tpu_info().vmem_capacity_bytes)
    except Exception:
        vmem_cap = 64 << 20
    if target_tile_bytes is None:
        target_tile_bytes = max(1 << 20, min(8 << 20, vmem_cap // 16))

    row_bytes = Lp * x2.dtype.itemsize
    tb = _choose_batch_tile(Bp, row_bytes, target_tile_bytes)
    grid_len = _cdiv(Bp, tb)
    tile_bytes = tb * row_bytes
    # footprint ~ 2x double-buffered in + 2x out + 1-2x f32 intermediates
    vmem_limit = int(min(vmem_cap * 3 // 4, max(32 << 20, 6 * tile_bytes + (2 << 20))))

    kernel = functools.partial(band_attention_kernel, nodes=N, bands=F)

    def full(shape):
        return pl.BlockSpec(shape, lambda i: (0,) * len(shape))

    out2 = pl.pallas_call(
        kernel,
        out_shape=jax.ShapeDtypeStruct((Bp, Lp), x2.dtype),
        grid=(grid_len,),
        in_specs=[
            pl.BlockSpec((tb, Lp), lambda i: (i, 0)),   # x tile (lane-dense)
            full((F, H)), full((1, H)),                 # band_interaction Linear 1
            full((H, F)), full((1, F)),                 # band_interaction Linear 2
            full((F, H)), full((1, H)),                 # band_weights Linear 1
            full((H, H)), full((1, H)),                 # band_weights Linear 2
            full((H, F)), full((1, F)),                 # band_weights Linear 3
        ],
        out_specs=pl.BlockSpec((tb, Lp), lambda i: (i, 0)),
        compiler_params=pltpu.CompilerParams(
            dimension_semantics=("parallel",),
            vmem_limit_bytes=vmem_limit,
        ),
    )(x2, wi1, bi1, wi2, bi2, ww1, bw1, ww2, bw2, ww3, bw3)

    out2 = out2[:B, :L]
    return out2.reshape(orig_shape)


def reference(x, params):
    """Pure-JAX reference for the same (eval-mode) forward."""
    wi1, bi1, wi2, bi2, ww1, bw1, ww2, bw2, ww3, bw3 = params
    orig = x.shape
    x3 = x.reshape(-1, orig[-2], orig[-1]) if x.ndim == 4 else x
    band = jnp.mean(x3, axis=1)
    mband = jnp.max(x3, axis=1)
    combined = (band + mband) / 2

    def leaky(v):
        return jnp.where(v >= 0, v, LEAKY_SLOPE * v)

    hi = leaky(combined @ wi1 + bi1[0])
    inter = jax.nn.sigmoid(hi @ wi2 + bi2[0])
    z = combined * inter
    h1 = leaky(z @ ww1 + bw1[0])
    h2 = leaky(h1 @ ww2 + bw2[0])
    logits = h2 @ ww3 + bw3[0]
    w = jax.nn.softmax(logits, axis=-1)
    out = x3 * w[:, None, :]
    return out.reshape(orig) if x.ndim == 4 else out


if __name__ == "__main__":
    key = jax.random.PRNGKey(0)
    batch, num_samples, num_nodes, num_bands = 2, 4, 16, 16
    hidden_dim = 32

    keys = jax.random.split(key, 12)
    x = jax.random.normal(
        keys[0], (batch, num_samples, num_nodes, num_bands), jnp.float32)

    def linear_init(kw, kb, fan_in, fan_out):
        lim = 1.0 / jnp.sqrt(jnp.float32(fan_in))
        w = jax.random.uniform(kw, (fan_in, fan_out), jnp.float32, -lim, lim)
        b = jax.random.uniform(kb, (1, fan_out), jnp.float32, -lim, lim)
        return w, b

    # band_interaction: Linear(F,H), Linear(H,F)
    wi1, bi1 = linear_init(keys[1], keys[2], num_bands, hidden_dim)
    wi2, bi2 = linear_init(keys[3], keys[4], hidden_dim, num_bands)
    # band_weights: Linear(F,H), Linear(H,H), Linear(H,F)
    ww1, bw1 = linear_init(keys[5], keys[6], num_bands, hidden_dim)
    ww2, bw2 = linear_init(keys[7], keys[8], hidden_dim, hidden_dim)
    ww3, bw3 = linear_init(keys[9], keys[10], hidden_dim, num_bands)

    params = (wi1, bi1, wi2, bi2, ww1, bw1, ww2, bw2, ww3, bw3)

    out = enhanced_band_attention(x, params)
    out = jax.block_until_ready(out)

    ref = reference(x, params)
    assert out.shape == x.shape

    # Everything is exact f32 except the softmax denominator, which uses the
    # EUP approximate reciprocal (per perf review) -> slightly looser bound.
    tol = 2e-3 if _HAS_PL_RECIPROCAL else 1e-4
    err = float(jnp.max(jnp.abs(out - ref)))
    assert jnp.allclose(out, ref, atol=tol, rtol=tol), f"max abs err = {err}"
    print("KERNEL_OK")
</pallas_src>

<mosaic_0001>
module attributes {stable_mosaic.version = 11 : i64} {
  func.func @band_attention_kernel(%arg0: i32, %arg1: memref<8x256xf32, #tpu.memory_space<vmem>>, %arg2: memref<16x32xf32, #tpu.memory_space<vmem>>, %arg3: memref<1x32xf32, #tpu.memory_space<vmem>>, %arg4: memref<32x16xf32, #tpu.memory_space<vmem>>, %arg5: memref<1x16xf32, #tpu.memory_space<vmem>>, %arg6: memref<16x32xf32, #tpu.memory_space<vmem>>, %arg7: memref<1x32xf32, #tpu.memory_space<vmem>>, %arg8: memref<32x32xf32, #tpu.memory_space<vmem>>, %arg9: memref<1x32xf32, #tpu.memory_space<vmem>>, %arg10: memref<32x16xf32, #tpu.memory_space<vmem>>, %arg11: memref<1x16xf32, #tpu.memory_space<vmem>>, %arg12: memref<8x256xf32, #tpu.memory_space<vmem>>) attributes {dimension_semantics = [#tpu.dimension_semantics<parallel>], iteration_bounds = array<i64: 1>, scalar_prefetch = 0 : i64, scratch_operands = 0 : i64, tpu.core_type = #tpu.core_type<tc>, window_params = [{transform_indices = @transform_0, window_bounds = array<i64: 8, 256>}, {pipeline_mode = #tpu.pipeline_mode<synchronous>, transform_indices = @transform_1, window_bounds = array<i64: 16, 32>}, {pipeline_mode = #tpu.pipeline_mode<synchronous>, transform_indices = @transform_2, window_bounds = array<i64: 1, 32>}, {pipeline_mode = #tpu.pipeline_mode<synchronous>, transform_indices = @transform_3, window_bounds = array<i64: 32, 16>}, {pipeline_mode = #tpu.pipeline_mode<synchronous>, transform_indices = @transform_4, window_bounds = array<i64: 1, 16>}, {pipeline_mode = #tpu.pipeline_mode<synchronous>, transform_indices = @transform_5, window_bounds = array<i64: 16, 32>}, {pipeline_mode = #tpu.pipeline_mode<synchronous>, transform_indices = @transform_6, window_bounds = array<i64: 1, 32>}, {pipeline_mode = #tpu.pipeline_mode<synchronous>, transform_indices = @transform_7, window_bounds = array<i64: 32, 32>}, {pipeline_mode = #tpu.pipeline_mode<synchronous>, transform_indices = @transform_8, window_bounds = array<i64: 1, 32>}, {pipeline_mode = #tpu.pipeline_mode<synchronous>, transform_indices = @transform_9, window_bounds = array<i64: 32, 16>}, {pipeline_mode = #tpu.pipeline_mode<synchronous>, transform_indices = @transform_10, window_bounds = array<i64: 1, 16>}, {transform_indices = @transform_11, window_bounds = array<i64: 8, 256>}]} {
    %c0 = arith.constant 0 : index
    %c0_0 = arith.constant 0 : index
    %0 = vector.load %arg1[%c0, %c0_0] : memref<8x256xf32, #tpu.memory_space<vmem>>, vector<8x128xf32>
    %c0_1 = arith.constant 0 : index
    %c128 = arith.constant 128 : index
    %1 = vector.load %arg1[%c0_1, %c128] : memref<8x256xf32, #tpu.memory_space<vmem>>, vector<8x128xf32>
    %2 = arith.addf %0, %1 : vector<8x128xf32>
    %3 = arith.maximumf %0, %1 : vector<8x128xf32>
    %c64_i32 = arith.constant 64 : i32
    %4 = tpu.dynamic_rotate %2 by %c64_i32 dim 1 : vector<8x128xf32>, i32 -> vector<8x128xf32>
    %5 = arith.addf %2, %4 : vector<8x128xf32>
    %c64_i32_2 = arith.constant 64 : i32
    %6 = tpu.dynamic_rotate %3 by %c64_i32_2 dim 1 : vector<8x128xf32>, i32 -> vector<8x128xf32>
    %7 = arith.maximumf %3, %6 : vector<8x128xf32>
    %c32_i32 = arith.constant 32 : i32
    %8 = tpu.dynamic_rotate %5 by %c32_i32 dim 1 : vector<8x128xf32>, i32 -> vector<8x128xf32>
    %9 = arith.addf %5, %8 : vector<8x128xf32>
    %c32_i32_3 = arith.constant 32 : i32
    %10 = tpu.dynamic_rotate %7 by %c32_i32_3 dim 1 : vector<8x128xf32>, i32 -> vector<8x128xf32>
    %11 = arith.maximumf %7, %10 : vector<8x128xf32>
    %c16_i32 = arith.constant 16 : i32
    %12 = tpu.dynamic_rotate %9 by %c16_i32 dim 1 : vector<8x128xf32>, i32 -> vector<8x128xf32>
    %13 = arith.addf %9, %12 : vector<8x128xf32>
    %c16_i32_4 = arith.constant 16 : i32
    %14 = tpu.dynamic_rotate %11 by %c16_i32_4 dim 1 : vector<8x128xf32>, i32 -> vector<8x128xf32>
    %15 = arith.maximumf %11, %14 : vector<8x128xf32>
    %16 = vector.extract_strided_slice %13 {offsets = [0, 0], sizes = [8, 16], strides = [1, 1]} : vector<8x128xf32> to vector<8x16xf32>
    %17 = vector.extract_strided_slice %15 {offsets = [0, 0], sizes = [8, 16], strides = [1, 1]} : vector<8x128xf32> to vector<8x16xf32>
    %cst = arith.constant 6.250000e-02 : f32
    %18 = vector.broadcast %cst : f32 to vector<8x16xf32>
    %19 = arith.mulf %16, %18 : vector<8x16xf32>
    %20 = arith.addf %19, %17 : vector<8x16xf32>
    %cst_5 = arith.constant 5.000000e-01 : f32
    %21 = vector.broadcast %cst_5 : f32 to vector<8x16xf32>
    %22 = arith.mulf %20, %21 : vector<8x16xf32>
    %c0_6 = arith.constant 0 : index
    %c0_7 = arith.constant 0 : index
    %23 = vector.load %arg2[%c0_6, %c0_7] : memref<16x32xf32, #tpu.memory_space<vmem>>, vector<16x32xf32>
    %cst_8 = arith.constant dense<0.000000e+00> : vector<8x32xf32>
    %24 = tpu.matmul %22, %23, %cst_8 {dimension_numbers = #tpu.dot_dimension_numbers<[1], [0], [0], [1], [0, 0, 1, 1], [], []>} : vector<8x16xf32>, vector<16x32xf32>, vector<8x32xf32> -> vector<8x32xf32>
    %c0_9 = arith.constant 0 : index
    %c0_10 = arith.constant 0 : index
    %25 = vector.load %arg3[%c0_9, %c0_10] : memref<1x32xf32, #tpu.memory_space<vmem>>, vector<1x32xf32>
    %26 = vector.broadcast %25 : vector<1x32xf32> to vector<8x32xf32>
    %27 = arith.addf %24, %26 : vector<8x32xf32>
    %cst_11 = arith.constant 0.000000e+00 : f32
    %28 = vector.broadcast %cst_11 : f32 to vector<8x32xf32>
    %29 = arith.cmpf oge, %27, %28 : vector<8x32xf32>
    %cst_12 = arith.constant 2.000000e-01 : f32
    %30 = vector.broadcast %cst_12 : f32 to vector<8x32xf32>
    %31 = arith.mulf %30, %27 : vector<8x32xf32>
    %32 = arith.select %29, %27, %31 : vector<8x32xi1>, vector<8x32xf32>
    %c0_13 = arith.constant 0 : index
    %c0_14 = arith.constant 0 : index
    %33 = vector.load %arg4[%c0_13, %c0_14] : memref<32x16xf32, #tpu.memory_space<vmem>>, vector<32x16xf32>
    %cst_15 = arith.constant dense<0.000000e+00> : vector<8x16xf32>
    %34 = tpu.matmul %32, %33, %cst_15 {dimension_numbers = #tpu.dot_dimension_numbers<[1], [0], [0], [1], [0, 0, 1, 1], [], []>} : vector<8x32xf32>, vector<32x16xf32>, vector<8x16xf32> -> vector<8x16xf32>
    %c0_16 = arith.constant 0 : index
    %c0_17 = arith.constant 0 : index
    %35 = vector.load %arg5[%c0_16, %c0_17] : memref<1x16xf32, #tpu.memory_space<vmem>>, vector<1x16xf32>
    %36 = vector.broadcast %35 : vector<1x16xf32> to vector<8x16xf32>
    %37 = arith.addf %34, %36 : vector<8x16xf32>
    %38 = arith.negf %37 : vector<8x16xf32>
    %39 = math.exp %38 : vector<8x16xf32>
    %cst_18 = arith.constant 1.000000e+00 : f32
    %40 = vector.broadcast %cst_18 : f32 to vector<8x16xf32>
    %41 = arith.addf %40, %39 : vector<8x16xf32>
    %42 = arith.divf %40, %41 : vector<8x16xf32>
    %43 = arith.mulf %22, %42 : vector<8x16xf32>
    %c0_19 = arith.constant 0 : index
    %c0_20 = arith.constant 0 : index
    %44 = vector.load %arg6[%c0_19, %c0_20] : memref<16x32xf32, #tpu.memory_space<vmem>>, vector<16x32xf32>
    %cst_21 = arith.constant dense<0.000000e+00> : vector<8x32xf32>
    %45 = tpu.matmul %43, %44, %cst_21 {dimension_numbers = #tpu.dot_dimension_numbers<[1], [0], [0], [1], [0, 0, 1, 1], [], []>} : vector<8x16xf32>, vector<16x32xf32>, vector<8x32xf32> -> vector<8x32xf32>
    %c0_22 = arith.constant 0 : index
    %c0_23 = arith.constant 0 : index
    %46 = vector.load %arg7[%c0_22, %c0_23] : memref<1x32xf32, #tpu.memory_space<vmem>>, vector<1x32xf32>
    %47 = vector.broadcast %46 : vector<1x32xf32> to vector<8x32xf32>
    %48 = arith.addf %45, %47 : vector<8x32xf32>
    %cst_24 = arith.constant 0.000000e+00 : f32
    %49 = vector.broadcast %cst_24 : f32 to vector<8x32xf32>
    %50 = arith.cmpf oge, %48, %49 : vector<8x32xf32>
    %cst_25 = arith.constant 2.000000e-01 : f32
    %51 = vector.broadcast %cst_25 : f32 to vector<8x32xf32>
    %52 = arith.mulf %51, %48 : vector<8x32xf32>
    %53 = arith.select %50, %48, %52 : vector<8x32xi1>, vector<8x32xf32>
    %c0_26 = arith.constant 0 : index
    %c0_27 = arith.constant 0 : index
    %54 = vector.load %arg8[%c0_26, %c0_27] : memref<32x32xf32, #tpu.memory_space<vmem>>, vector<32x32xf32>
    %cst_28 = arith.constant dense<0.000000e+00> : vector<8x32xf32>
    %55 = tpu.matmul %53, %54, %cst_28 {dimension_numbers = #tpu.dot_dimension_numbers<[1], [0], [0], [1], [0, 0, 1, 1], [], []>} : vector<8x32xf32>, vector<32x32xf32>, vector<8x32xf32> -> vector<8x32xf32>
    %c0_29 = arith.constant 0 : index
    %c0_30 = arith.constant 0 : index
    %56 = vector.load %arg9[%c0_29, %c0_30] : memref<1x32xf32, #tpu.memory_space<vmem>>, vector<1x32xf32>
    %57 = vector.broadcast %56 : vector<1x32xf32> to vector<8x32xf32>
    %58 = arith.addf %55, %57 : vector<8x32xf32>
    %cst_31 = arith.constant 0.000000e+00 : f32
    %59 = vector.broadcast %cst_31 : f32 to vector<8x32xf32>
    %60 = arith.cmpf oge, %58, %59 : vector<8x32xf32>
    %cst_32 = arith.constant 2.000000e-01 : f32
    %61 = vector.broadcast %cst_32 : f32 to vector<8x32xf32>
    %62 = arith.mulf %61, %58 : vector<8x32xf32>
    %63 = arith.select %60, %58, %62 : vector<8x32xi1>, vector<8x32xf32>
    %c0_33 = arith.constant 0 : index
    %c0_34 = arith.constant 0 : index
    %64 = vector.load %arg10[%c0_33, %c0_34] : memref<32x16xf32, #tpu.memory_space<vmem>>, vector<32x16xf32>
    %cst_35 = arith.constant dense<0.000000e+00> : vector<8x16xf32>
    %65 = tpu.matmul %63, %64, %cst_35 {dimension_numbers = #tpu.dot_dimension_numbers<[1], [0], [0], [1], [0, 0, 1, 1], [], []>} : vector<8x32xf32>, vector<32x16xf32>, vector<8x16xf32> -> vector<8x16xf32>
    %c0_36 = arith.constant 0 : index
    %c0_37 = arith.constant 0 : index
    %66 = vector.load %arg11[%c0_36, %c0_37] : memref<1x16xf32, #tpu.memory_space<vmem>>, vector<1x16xf32>
    %67 = vector.broadcast %66 : vector<1x16xf32> to vector<8x16xf32>
    %68 = arith.addf %65, %67 : vector<8x16xf32>
    %cst_38 = arith.constant dense<0xFF800000> : vector<8xf32>
    %69 = vector.multi_reduction <maximumf>, %68, %cst_38 [1] : vector<8x16xf32> to vector<8xf32>
    %70 = vector.shape_cast %69 : vector<8xf32> to vector<8x1xf32>
    %71 = vector.broadcast %70 : vector<8x1xf32> to vector<8x16xf32>
    %72 = arith.subf %68, %71 : vector<8x16xf32>
    %73 = math.exp %72 : vector<8x16xf32>
    %cst_39 = arith.constant dense<0.000000e+00> : vector<8xf32>
    %74 = vector.multi_reduction <add>, %73, %cst_39 [1] : vector<8x16xf32> to vector<8xf32>
    %75 = vector.shape_cast %74 : vector<8xf32> to vector<8x1xf32>
    %76 = tpu.reciprocal %75 {approx = true} : vector<8x1xf32> -> vector<8x1xf32>
    %77 = vector.broadcast %76 : vector<8x1xf32> to vector<8x16xf32>
    %78 = arith.mulf %73, %77 : vector<8x16xf32>
    %79 = tpu.concatenate %78, %78, %78, %78, %78, %78, %78, %78 in 1 : vector<8x16xf32>, vector<8x16xf32>, vector<8x16xf32>, vector<8x16xf32>, vector<8x16xf32>, vector<8x16xf32>, vector<8x16xf32>, vector<8x16xf32> -> vector<8x128xf32>
    %c0_40 = arith.constant 0 : index
    %c0_41 = arith.constant 0 : index
    %80 = vector.load %arg1[%c0_40, %c0_41] : memref<8x256xf32, #tpu.memory_space<vmem>>, vector<8x128xf32>
    %81 = arith.mulf %80, %79 : vector<8x128xf32>
    %c0_42 = arith.constant 0 : index
    %c0_43 = arith.constant 0 : index
    %82 = vector.load %arg12[%c0_42, %c0_43] : memref<8x256xf32, #tpu.memory_space<vmem>>, vector<8x128xf32>
    tpu.vector_store %arg12[%c0_42, %c0_43], %81 {strides = array<i32>} : memref<8x256xf32, #tpu.memory_space<vmem>>, vector<8x128xf32>,
    %c0_44 = arith.constant 0 : index
    %c128_45 = arith.constant 128 : index
    %83 = vector.load %arg1[%c0_44, %c128_45] : memref<8x256xf32, #tpu.memory_space<vmem>>, vector<8x128xf32>
    %84 = arith.mulf %83, %79 : vector<8x128xf32>
    %c0_46 = arith.constant 0 : index
    %c128_47 = arith.constant 128 : index
    %85 = vector.load %arg12[%c0_46, %c128_47] : memref<8x256xf32, #tpu.memory_space<vmem>>, vector<8x128xf32>
    tpu.vector_store %arg12[%c0_46, %c128_47], %84 {strides = array<i32>} : memref<8x256xf32, #tpu.memory_space<vmem>>, vector<8x128xf32>,
    return
  }
  func.func @transform_0(%arg0: i32) -> (i32, i32) {
    %c0_i32 = arith.constant 0 : i32
    %c0_i32_0 = arith.constant 0 : i32
    return %arg0, %c0_i32 : i32, i32
  }
  func.func @transform_1(%arg0: i32) -> (i32, i32) {
    %c0_i32 = arith.constant 0 : i32
    %c0_i32_0 = arith.constant 0 : i32
    %c0_i32_1 = arith.constant 0 : i32
    return %c0_i32, %c0_i32_0 : i32, i32
  }
  func.func @transform_2(%arg0: i32) -> (i32, i32) {
    %c0_i32 = arith.constant 0 : i32
    %c0_i32_0 = arith.constant 0 : i32
    %c0_i32_1 = arith.constant 0 : i32
    return %c0_i32, %c0_i32_0 : i32, i32
  }
  func.func @transform_3(%arg0: i32) -> (i32, i32) {
    %c0_i32 = arith.constant 0 : i32
    %c0_i32_0 = arith.constant 0 : i32
    %c0_i32_1 = arith.constant 0 : i32
    return %c0_i32, %c0_i32_0 : i32, i32
  }
  func.func @transform_4(%arg0: i32) -> (i32, i32) {
    %c0_i32 = arith.constant 0 : i32
    %c0_i32_0 = arith.constant 0 : i32
    %c0_i32_1 = arith.constant 0 : i32
    return %c0_i32, %c0_i32_0 : i32, i32
  }
  func.func @transform_5(%arg0: i32) -> (i32, i32) {
    %c0_i32 = arith.constant 0 : i32
    %c0_i32_0 = arith.constant 0 : i32
    %c0_i32_1 = arith.constant 0 : i32
    return %c0_i32, %c0_i32_0 : i32, i32
  }
  func.func @transform_6(%arg0: i32) -> (i32, i32) {
    %c0_i32 = arith.constant 0 : i32
    %c0_i32_0 = arith.constant 0 : i32
    %c0_i32_1 = arith.constant 0 : i32
    return %c0_i32, %c0_i32_0 : i32, i32
  }
  func.func @transform_7(%arg0: i32) -> (i32, i32) {
    %c0_i32 = arith.constant 0 : i32
    %c0_i32_0 = arith.constant 0 : i32
    %c0_i32_1 = arith.constant 0 : i32
    return %c0_i32, %c0_i32_0 : i32, i32
  }
  func.func @transform_8(%arg0: i32) -> (i32, i32) {
    %c0_i32 = arith.constant 0 : i32
    %c0_i32_0 = arith.constant 0 : i32
    %c0_i32_1 = arith.constant 0 : i32
    return %c0_i32, %c0_i32_0 : i32, i32
  }
  func.func @transform_9(%arg0: i32) -> (i32, i32) {
    %c0_i32 = arith.constant 0 : i32
    %c0_i32_0 = arith.constant 0 : i32
    %c0_i32_1 = arith.constant 0 : i32
    return %c0_i32, %c0_i32_0 : i32, i32
  }
  func.func @transform_10(%arg0: i32) -> (i32, i32) {
    %c0_i32 = arith.constant 0 : i32
    %c0_i32_0 = arith.constant 0 : i32
    %c0_i32_1 = arith.constant 0 : i32
    return %c0_i32, %c0_i32_0 : i32, i32
  }
  func.func @transform_11(%arg0: i32) -> (i32, i32) {
    %c0_i32 = arith.constant 0 : i32
    %c0_i32_0 = arith.constant 0 : i32
    return %arg0, %c0_i32 : i32, i32
  }
}

</mosaic_0001>

<bundles_post_ra>
// kernel: tpu_custom_call.1
= control target key start
LH: loop header
LB: loop body
LE: loop exit
PB: predicated region body
PF: predicated region fallthrough
CT: control target
= control target key end

     0   :  { %s901_s0 = inlined_call_operand.vmem [shape: f32[8,256], index: 0, kind: input, shape index: {}]   ;;  %s902_s1 = inlined_call_operand.vmem [shape: f32[16,32], index: 1, kind: input, shape index: {}]   ;;  %s903_s2 = inlined_call_operand.vmem [shape: f32[1,32], index: 2, kind: input, shape index: {}]   ;;  %s904_s3 = inlined_call_operand.vmem [shape: f32[32,16], index: 3, kind: input, shape index: {}]   ;;  %s905_s4 = inlined_call_operand.vmem [shape: f32[1,16], index: 4, kind: input, shape index: {}]   ;;  %s906_s5 = inlined_call_operand.vmem [shape: f32[16,32], index: 5, kind: input, shape index: {}]   ;;  %s907_s6 = inlined_call_operand.vmem [shape: f32[1,32], index: 6, kind: input, shape index: {}]   ;;  %s908_s7 = inlined_call_operand.vmem [shape: f32[32,32], index: 7, kind: input, shape index: {}]   ;;  %s909_s8 = inlined_call_operand.vmem [shape: f32[1,32], index: 8, kind: input, shape index: {}]   ;;  %s910_s9 = inlined_call_operand.vmem [shape: f32[32,16], index: 9, kind: input, shape index: {}]   ;;  %s911_s10 = inlined_call_operand.vmem [shape: f32[1,16], index: 10, kind: input, shape index: {}]   ;;  %s912_s11 = inlined_call_operand.hbm [shape: f32[8,256], index: 11, kind: output, shape index: {}]  }
   0x1   :  { %v782_v0 = vld [vmem:[%s901_s0] sm:$0xff]  ;;  %v787_v1 = vld [vmem:[%s901_s0 + $0x8] sm:$0xff] }
   0x2   :  { %16 = vsyncpa [#allocation3], 0  ;;  %v41_v2 = vadd.f32 %v787_v1, %v782_v0  ;;  %v42_v3 = vmax.f32 %v782_v0, %v787_v1  ;;  %s708_s21 = smov 64   ;;  %s709_s22 = smov 32   ;;  %v64_v8 = vld [vmem:[%s902_s1] sm:$0xff]  ;;  %v65_v9 = vld [vmem:[%s902_s1 + $0x8] sm:$0xff] }
   0x3   :  { %v642_v10 = vpack.c.bf16 %v65_v9, %v64_v8  ;;  %v710_v11 = vmov 0.0|0.0   ;;  %vm711_vm0 = vmmov 0   ;;  %v712_v12 = vmov 0.0   ;;  %v150_v14 = vld [vmem:[%s904_s3] sm:$0xff]  ;;  %v151_v15 = vld [vmem:[%s904_s3 + $0x8] sm:$0xff]  ;;  %s713_s29 = smov 16  }
   0x4   :  { %43 = vrot.lane.b32.xlu0 %v41_v2, %s708_s21  ;;  %641 = vmatprep.subr.bf16.mxu0 %v710_v11  ;;  %v645_v17 = vpack.c.bf16 %v151_v15, %v150_v14  ;;  %vm73_vm1 = vcmask 130048   ;;  %v152_v27 = vld [vmem:[%s904_s3 + $0x10] sm:$0xff]  ;;  %v153_v28 = vld [vmem:[%s904_s3 + $0x18] sm:$0xff]  ;;  %v562_v30 = vld [vmem:[%s903_s2] ss:$0 sm:$0xff]  ;;  %vm161_vm3 = vcmask 261120  }
   0x5   :  { %644 = vmatprep.subr.bf16.mxu1 %v710_v11  ;;  %643 = vmatpush3.bf16.msra.mxu0 %v642_v10  ;;  %v648_v29 = vpack.c.bf16 %v153_v28, %v152_v27  ;;  %v242_v36 = vld [vmem:[%s906_s5] sm:$0xff]  ;;  %v243_v37 = vld [vmem:[%s906_s5 + $0x8] sm:$0xff]  ;;  %v329_v51 = vld [vmem:[%s908_s7 + $0x10] sm:$0xff]  ;;  %s717_s2 = smov 112   ;;  %vm533_vm6 = vcmask 392192   ;;  %vm535_vm7 = vcmask 523264  }
   0x6   :  { %650 = vmatprep.subr.bf16.mxu0 %v710_v11  ;;  %598 = vmatprep.mubr.msk.f32.mxu0 %vm711_vm0, %v712_v12  ;;  %v651_v38 = vpack.c.bf16 %v243_v37, %v242_v36  ;;  %v564_v39 = vld [vmem:[%s905_s4] ss:$0 sm:$0xff]  ;;  %v328_v47 = vld [vmem:[%s908_s7 + $0x8] sm:$0xff]  ;;  %v330_v52 = vld [vmem:[%s908_s7 + $0x18] sm:$0xff]  ;;  %vm537_vm8 = vcmask 654336   ;;  %vm539_vm9 = vcmask 785408  }
   0x7   :  { %609 = vmatprep.mubr.msk.f32.mxu1 %vm711_vm0, %v712_v12  ;;  %646 = vmatpush3.bf16.msra.mxu1 %v645_v17  ;;  %v327_v46 = vld [vmem:[%s908_s7] sm:$0xff]  ;;  %v657_v53 = vpack.c.bf16 %v330_v52, %v329_v51  ;;  %v415_v55 = vld [vmem:[%s910_s9 + $0x8] sm:$0xff]  ;;  %v416_v63 = vld [vmem:[%s910_s9 + $0x10] sm:$0xff]  ;;  %vm541_vm10 = vcmask 916480  }
   0x8   :  { %46 = vrot.lane.b32.xlu0 %v42_v3, %s708_s21  ;;  %647 = vmatprep.subr.bf16.mxu1 %v710_v11  ;;  %v654_v49 = vpack.c.bf16 %v328_v47, %v327_v46  ;;  %v414_v54 = vld [vmem:[%s910_s9] sm:$0xff] }
   0x9   :  { %v660_v56 = vpack.c.bf16 %v415_v55, %v414_v54  ;;  %v567_v57 = vld [vmem:[%s907_s6] ss:$0 sm:$0xff] }
   0xa   :  { %v571_v10 = vld [vmem:[%s911_s10] ss:$0 sm:$0xff]  ;;  %s716_s10 = smov 80  }
   0xb   :  { %649 = vmatpush3.bf16.msra.mxu1 %v648_v29 }
   0xc   :  { %659 = vmatprep.subr.bf16.mxu1 %v710_v11 }
  0x76   :  { %v44_v4 = vpop.permute.xlu0 %43 }
  0x77   :  { %v45_v5 = vadd.f32 %v44_v4, %v41_v2  ;;  %v417_v2 = vld [vmem:[%s910_s9 + $0x18] sm:$0xff]  ;;  %v569_v4 = vld [vmem:[%s909_s8] ss:$0 sm:$0xff]  ;;  %s714_s8 = smov 48   ;;  %s715_s9 = smov 96  }
  0x79   :  { %49 = vrot.lane.b32.xlu1 %v45_v5, %s709_s22 }
  0x7a   :  { %v47_v6 = vpop.permute.xlu0 %46 }
  0x7b   :  { %v48_v7 = vmax.f32 %v42_v3, %v47_v6  ;;  %v663_v3 = vpack.c.bf16 %v417_v2, %v416_v63 }
  0x7d   :  { %52 = vrot.lane.b32.xlu1 %v48_v7, %s709_s22 }
  0xeb   :  { %v50_v13 = vpop.permute.xlu1 %49 }
  0xec   :  { %v51_v16 = vadd.f32 %v50_v13, %v45_v5 }
  0xee   :  { %55 = vrot.lane.b32.xlu0 %v51_v16, %s713_s29 }
  0xef   :  { %v53_v18 = vpop.permute.xlu1 %52 }
  0xf0   :  { %v54_v19 = vmax.f32 %v48_v7, %v53_v18 }
  0xf2   :  { %58 = vrot.lane.b32.xlu1 %v54_v19, %s713_s29 }
 0x160   :  { %v56_v20 = vpop.permute.xlu0 %55 }
 0x161   :  { %v57_v21 = vadd.f32 %v56_v20, %v51_v16 }
 0x163   :  { %v61_v23 = vmul.f32 0.0625, %v57_v21 }
 0x164   :  { %v59_v22 = vpop.permute.xlu1 %58 }
 0x165   :  { %v60_v24 = vmax.f32 %v54_v19, %v59_v22 }
 0x167   :  { %v62_v25 = vadd.f32 %v61_v23, %v60_v24 }
 0x169   :  { %v63_v26 = vmul.f32 0.5, %v62_v25 }
 0x16b   :  { %599 = vmatmul.mubr.msk.f32.vlgmr.msra.gmra.mrb[0].mxu0 %vm73_vm1, %v63_v26 }
 0x16c   :  { %616 = vmatprep.mubr.msk.f32.mxu0 %vm711_vm0, %v712_v12  ;;  %652 = vmatpush3.bf16.msra.mxu0 %v651_v38 }
 0x16d   :  { %653 = vmatprep.subr.bf16.mxu0 %v710_v11 }
 0x23e   :  { %v143_v31 = vpop.f32.mrb[0].mxu0 }
 0x23f   :  { %v144_v32 = vadd.f32 %v562_v30, %v143_v31  ;;  %v600_v33 = vpop.f32.mrb[1].mxu0 }
 0x241   :  { %vm147_vm2 = vcmp.ge.f32.partialorder %v144_v32, 0.0  ;;  %v148_v34 = vmul.f32 0.2, %v144_v32 }
 0x243   :  { %v149_v35 = vsel %vm147_vm2, %v144_v32, %v148_v34 }
 0x244   :  { %610 = vmatmul.mubr.msk.f32.vlgmr.msra.gmra.mrb[0].mxu1 %vm161_vm3, %v149_v35 }
 0x245   :  { %638 = vmatprep.mubr.msk.f32.mxu1 %vm711_vm0, %v712_v12  ;;  %661 = vmatpush3.bf16.msra.mxu1 %v660_v56 }
 0x246   :  { %662 = vmatprep.subr.bf16.mxu1 %v710_v11 }
 0x249   :  { %664 = vmatpush3.bf16.msra.mxu1 %v663_v3 }
 0x317   :  { %v231_v40 = vpop.f32.mrb[0].mxu1 }
 0x318   :  { %v232_v41 = vadd.f32 %v564_v39, %v231_v40  ;;  %v611_v42 = vpop.f32.mrb[1].mxu1 }
 0x31a   :  { %v566_v43 = vmul.f32 -1.442695, %v232_v41 }
 0x31c   :  { %676 = vpow2.f32 %v566_v43 }
 0x326   :  { %v677_v44 = vpop.eup %676 }
 0x327   :  { %v238_v45 = vadd.f32 1.0, %v677_v44 }
 0x329   :  { %678 = vrcp.f32 %v238_v45 }
 0x333   :  { %v679_v48 = vpop.eup %678 }
 0x334   :  { %v241_v50 = vmul.f32 %v679_v48, %v63_v26 }
 0x336   :  { %617 = vmatmul.mubr.msk.f32.vlgmr.msra.gmra.mrb[2].mxu0 %vm73_vm1, %v241_v50 }
 0x337   :  { %655 = vmatpush3.bf16.msra.mxu0 %v654_v49  ;;  %627 = vmatprep.mubr.msk.f32.mxu0 %vm711_vm0, %v712_v12 }
 0x338   :  { %656 = vmatprep.subr.bf16.mxu0 %v710_v11 }
 0x33b   :  { %658 = vmatpush3.bf16.msra.mxu0 %v657_v53 }
 0x409   :  { %v320_v58 = vpop.f32.mrb[2].mxu0 }
 0x40a   :  { %v321_v59 = vadd.f32 %v567_v57, %v320_v58  ;;  %v618_v60 = vpop.f32.mrb[3].mxu0 }
 0x40c   :  { %vm324_vm4 = vcmp.ge.f32.partialorder %v321_v59, 0.0  ;;  %v325_v61 = vmul.f32 0.2, %v321_v59 }
 0x40e   :  { %v326_v62 = vsel %vm324_vm4, %v321_v59, %v325_v61 }
 0x40f   :  { %628 = vmatmul.mubr.msk.f32.vlgmr.msra.gmra.mrb[4].mxu0 %vm161_vm3, %v326_v62 }
 0x4e2   :  { %v407_v5 = vpop.f32.mrb[4].mxu0 }
 0x4e3   :  { %v408_v6 = vadd.f32 %v569_v4, %v407_v5  ;;  %v629_v7 = vpop.f32.mrb[5].mxu0 }
 0x4e5   :  { %vm411_vm5 = vcmp.ge.f32.partialorder %v408_v6, 0.0  ;;  %v412_v8 = vmul.f32 0.2, %v408_v6 }
 0x4e7   :  { %v413_v9 = vsel %vm411_vm5, %v408_v6, %v412_v8 }
 0x4e8   :  { %639 = vmatmul.mubr.msk.f32.vlgmr.msra.gmra.mrb[2].mxu1 %vm161_vm3, %v413_v9 }
 0x5bb   :  { %v494_v11 = vpop.f32.mrb[2].mxu1 }
 0x5bc   :  { %v495_v12 = vadd.f32 %v571_v10, %v494_v11  ;;  %v640_v13 = vpop.f32.mrb[3].mxu1 }
 0x5be   :  { %v498_v14 = vsel %vm73_vm1, %v495_v12, -inf }
 0x5bf   :  { %499 = vmax.xlane.f32.xlu0 %v498_v14 }
 0x64c   :  { %v500_v15 = vpop.xlane.xlu0 %499 }
 0x64d   :  { %v501_v16 = vsub.f32 %v495_v12, %v500_v15 }
 0x64f   :  { %v502_v17 = vmul.f32 1.442695, %v501_v16 }
 0x651   :  { %680 = vpow2.f32 %v502_v17 }
 0x65b   :  { %v681_v18 = vpop.eup %680 }
 0x65c   :  { %v504_v19 = vsel %vm73_vm1, %v681_v18, 0.0 }
 0x65d   :  { %505 = vadd.xlane.f32.xlu1 %v504_v19 }
 0x6ea   :  { %v506_v20 = vpop.xlane.xlu1 %505 }
 0x6eb   :  { %682 = vrcp.f32 %v506_v20 }
 0x6f5   :  { %v683_v21 = vpop.eup %682 }
 0x6f6   :  { %v508_v22 = vmul.f32 %v683_v21, %v681_v18 }
 0x6f8   :  { %513 = vrot.lane.b32.xlu1 %v508_v22, %s709_s22  ;;  %510 = vrot.lane.b32.xlu0 %v508_v22, %s713_s29 }
 0x6fc   :  { %519 = vrot.lane.b32.xlu1 %v508_v22, %s708_s21  ;;  %516 = vrot.lane.b32.xlu0 %v508_v22, %s714_s8  ;;  %s718_s21 = smov [#allocation2]  }
 0x6fd   :  { %s554_s22 = sshll.u32 %s718_s21, 4  ;;  %s555_s22 = int_to_ptr.vmem [resolvable:$true] %s554_s22 }
 0x6fe   :  { %s684_s29 = scalar_lea.vmem %s555_s22, 256  ;;  %p689_p1 = scmp.lt.s32.totalorder %s555_s22, %s555_s22 }
 0x6ff   :  { %p685_p0 = scmp.ne.s32.totalorder %s555_s22, %s684_s29  ;;  %p690_p2 = scmp.lt.s32.totalorder %s684_s29, %s684_s29 }
 0x700   :  { %525 = vrot.lane.b32.xlu1 %v508_v22, %s715_s9  ;;  %522 = vrot.lane.b32.xlu0 %v508_v22, %s716_s10 }
 0x701   :  { %p691_p3 = por %p690_p2, %p689_p1 }
 0x703   :  { %p692_p4 = pnand %p691_p3, %p685_p0 }
 0x704   :  { %528 = vrot.lane.b32.xlu0 %v508_v22, %s717_s2 }
 0x76a   :  { %v514_v23 = vpop.permute.xlu1 %513  ;;  %v511_v24 = vpop.permute.xlu0 %510 }
 0x76b   :  { %v531_v25 = vsel %vm73_vm1, %v508_v22, %v511_v24 }
 0x76c   :  { %v532_v27 = vsel %vm161_vm3, %v531_v25, %v514_v23 }
 0x76e   :  { %v520_v26 = vpop.permute.xlu1 %519  ;;  %v517_v28 = vpop.permute.xlu0 %516 }
 0x76f   :  { %v534_v29 = vsel %vm533_vm6, %v532_v27, %v517_v28 }
 0x770   :  { %v536_v30 = vsel %vm535_vm7, %v534_v29, %v520_v26 }
 0x772   :  { %v523_v31 = vpop.permute.xlu0 %522  ;;  %v526_v32 = vpop.permute.xlu1 %525 }
 0x773   :  { %v538_v33 = vsel %vm537_vm8, %v536_v30, %v523_v31 }
 0x774   :  { %v540_v34 = vsel %vm539_vm9, %v538_v33, %v526_v32 }
 0x776   :  { %v529_v35 = vpop.permute.xlu0 %528 }
 0x777   :  { %v542_v36 = vsel %vm541_vm10, %v540_v34, %v529_v35 }
 0x778   :  { %v543_v37 = vmul.f32 %v542_v36, %v782_v0  ;;  %v546_v38 = vmul.f32 %v542_v36, %v787_v1 }
 0x77a   :  { %544 = vst [vmem:[#allocation2] sm:$0xff] %v543_v37  ;;  %547 = vst [vmem:[#allocation2 + $0x8] sm:$0xff] %v546_v38 }
 0x77b   :  { %695 = shalt.err (!%p692_p4)
}
 0x77c   :  { %s696_s23 = scalar_lea.hbm %s912_s11, 256 }
 0x77d   :  { %p697_p5 = scmp.ne.s32.totalorder %s912_s11, %s696_s23  ;;  %p700_p6 = scmp.lt.u32.totalorder %s696_s23, %s912_s11 }
 0x77f   :  { %p702_p7 = pnand %p700_p6, %p697_p5 }
 0x781   :  { %705 = shalt.err (!%p702_p7)
}
 0x782   :  { %557 = dma.vmem_to_hbm [thread:$0]  %s555_s22, 256, %s912_s11, [#allocation3]  }
 0x783   :  { %706 = dma.done.wait [#allocation3], 256  }
 0x784   :  { %707 = vsyncadd [#allocation3], 4294967040 }
 0x785   :  { %561 = vsyncpa [#allocation3], 1 }

</bundles_post_ra>
